<compile_context>
chip_gen: v6e
topology: v6e:2x2x1
jax: 0.10.0
libtpu: 0.0.40
codegen_flags: <defaults>
</compile_context>

<pallas_src>
import functools

import jax
import jax.numpy as jnp
from jax.experimental import pallas as pl
from jax.experimental.pallas import tpu as pltpu

_NEG_BIG = -1e30     # effectively -inf for padded class lanes, but NaN-safe
_LANE = 128
_SUBLANE = 8


def _round_up(x, m):
    return ((x + m - 1) // m) * m


def _pad_axis(arr, axis, new_size, value=0.0):
    pad = new_size - arr.shape[axis]
    if pad <= 0:
        return arr
    widths = [(0, 0)] * arr.ndim
    widths[axis] = (0, pad)
    return jnp.pad(arr, widths, constant_values=value)


def mlp_kernel(x_ref, w1_ref, b1_ref, w2_ref, b2_ref, o_ref):
    # ---- Linear 1: bf16 MXU inputs, f32 accumulate; bias + ReLU in f32 ----
    h = jnp.dot(x_ref[...], w1_ref[...], preferred_element_type=jnp.float32)
    h = jnp.maximum(h + b1_ref[...], 0.0)
    # Dropout: F.dropout(training=self.training) is identity at inference.
    # TODO(synk): training-mode dropout via pltpu.prng_seed / prng_random_bits.
    # ---- Linear 2: bf16 MXU inputs, f32 accumulate ----
    logits = jnp.dot(h.astype(w2_ref.dtype), w2_ref[...],
                     preferred_element_type=jnp.float32) + b2_ref[...]
    # ---- log_softmax along the class (last / lane) dim.  Padded class lanes
    # carry bias -1e30: never the max, exp underflows to exactly 0. ----
    m = jnp.max(logits, axis=-1, keepdims=True)
    shifted = logits - m
    lse = jnp.log(jnp.sum(jnp.exp(shifted), axis=-1, keepdims=True))
    o_ref[...] = (shifted - lse).astype(o_ref.dtype)


def prepare_mlp_params(w1, b1, w2, b2, *, compute_dtype=jnp.bfloat16):
    """One-time pad + cast of the Linear params (hoisted off the per-call path).

    w1: [nfeature, nhid], b1: [1, nhid] (or [nhid]), w2: [nhid, nclass],
    b2: [1, nclass] (or [nclass]).  Returns padded params plus nclass.
    """
    nfeature, nhid = w1.shape
    nclass = w2.shape[1]
    f_pad = _round_up(nfeature, _LANE)
    h_pad = _round_up(nhid, _LANE)
    c_pad = _round_up(nclass, _LANE)
    # Zero-pad contraction dims (exact); bf16 cast the MXU inputs.
    w1_p = _pad_axis(_pad_axis(w1, 0, f_pad), 1, h_pad).astype(compute_dtype)
    w2_p = _pad_axis(_pad_axis(w2, 0, h_pad), 1, c_pad).astype(compute_dtype)
    b1_p = _pad_axis(b1.reshape(1, -1).astype(jnp.float32), 1, h_pad)
    # Padded class lanes get -1e30 bias so they never affect max / sum(exp).
    b2_p = _pad_axis(b2.reshape(1, -1).astype(jnp.float32), 1, c_pad,
                     value=_NEG_BIG)
    # TODO(synk): int8 weights (v5e/v6e) / fp8 (v7x) with per-channel scales.
    return w1_p, b1_p, w2_p, b2_p, nclass


@functools.partial(
    jax.jit, static_argnames=("nclass", "max_tile_n", "single_buffer_weights"))
def _mlp_forward_impl(x, w1_p, b1_p, w2_p, b2_p, *, nclass, max_tile_n,
                      single_buffer_weights):
    n, _ = x.shape
    f_pad, h_pad = w1_p.shape
    c_pad = w2_p.shape[1]
    assert b1_p.shape == (1, h_pad) and b2_p.shape == (1, c_pad)

    # Per-call x prep: zero-pad only the contraction (feature) dim and cast to
    # the matmul input dtype (one fused pad+convert pass; halves x DMA bytes).
    x_p = _pad_axis(x, 1, f_pad).astype(w1_p.dtype)

    in_bytes = jnp.dtype(w1_p.dtype).itemsize
    f32_bytes = 4
    w_bufs = 1 if single_buffer_weights else 2

    def vmem_needed(tn):
        return (
            2 * tn * f_pad * in_bytes                               # x tiles (2 bufs)
            + 2 * tn * c_pad * f32_bytes                            # out tiles (2 bufs)
            + w_bufs * (f_pad * h_pad + h_pad * c_pad) * in_bytes   # resident weights
            + w_bufs * (h_pad + c_pad) * f32_bytes                  # resident biases
            + tn * (h_pad + c_pad) * f32_bytes                      # h / logits temps
        )

    try:
        vmem_physical = int(pltpu.get_tpu_info().vmem_capacity_bytes)
    except Exception:
        vmem_physical = 64 * 1024 * 1024            # v7x-safe default
    # 75% of physical, <=96 MiB (v5e/v6e: 128 MiB phys -> 96; v7x: 64 -> 48).
    vmem_cap = min((vmem_physical * 3) // 4, 96 * 1024 * 1024)
    scratch_margin = 4 * 1024 * 1024                # compiler scratch headroom

    # Largest power-of-two row tile (multiple of 8 sublanes) that fits the cap
    # and does not exceed the (rounded-up) problem size.
    row_ceiling = _round_up(max(n, _SUBLANE), _SUBLANE)
    tile_n = _SUBLANE
    cand = _SUBLANE
    while cand <= min(max_tile_n, row_ceiling):
        if vmem_needed(cand) + scratch_margin <= vmem_cap:
            tile_n = cand
        cand *= 2
    # TODO(synk): K-tiled fallback (extra grid axis over f_pad/h_pad with an
    # f32 acc scratch + pl.when init) for weights too large to stay
    # VMEM-resident on v7x's 64 MiB.

    vmem_limit = int(vmem_needed(tile_n) * 1.25) + scratch_margin
    vmem_limit = max(min(vmem_limit, vmem_cap), 16 * 1024 * 1024)

    grid_steps = pl.cdiv(n, tile_n)
    # Megacore row-sharding only pays with >=2 row tiles; otherwise it just
    # duplicates the resident-weight fetch on the 2-TC generation.
    semantics = ("parallel",) if grid_steps >= 2 else ("arbitrary",)

    def resident(shape):
        # Constant index_map -> fetched once; single buffer when supported.
        if single_buffer_weights:
            return pl.BlockSpec(shape, lambda i: (0, 0),
                                pipeline_mode=pl.Buffered(buffer_count=1))
        return pl.BlockSpec(shape, lambda i: (0, 0))

    grid_spec = pltpu.PrefetchScalarGridSpec(
        num_scalar_prefetch=0,
        grid=(grid_steps,),
        in_specs=[
            pl.BlockSpec((tile_n, f_pad), lambda i: (i, 0)),   # x: walks rows
            resident((f_pad, h_pad)),                          # W1
            resident((1, h_pad)),                              # b1
            resident((h_pad, c_pad)),                          # W2
            resident((1, c_pad)),                              # b2
        ],
        out_specs=pl.BlockSpec((tile_n, c_pad), lambda i: (i, 0)),
    )

    out_padded = pl.pallas_call(
        mlp_kernel,
        out_shape=jax.ShapeDtypeStruct((n, c_pad), jnp.float32),
        grid_spec=grid_spec,
        compiler_params=pltpu.CompilerParams(
            dimension_semantics=semantics,
            vmem_limit_bytes=vmem_limit,
        ),
    )(x_p, w1_p, b1_p, w2_p, b2_p)

    # Strip only the class-padding lanes (no row padding was materialized).
    return out_padded[:, :nclass]


# One-shot feature-detect cache for pipeline_mode=pl.Buffered(buffer_count=1).
_SINGLE_BUFFER_WEIGHTS_OK = None


def mlp_forward(x, w1_p, b1_p, w2_p, b2_p, nclass, *, max_tile_n=1024):
    """Fused MLP forward on pre-padded params (see prepare_mlp_params)."""
    global _SINGLE_BUFFER_WEIGHTS_OK
    if _SINGLE_BUFFER_WEIGHTS_OK is None:
        try:
            out = _mlp_forward_impl(
                x, w1_p, b1_p, w2_p, b2_p, nclass=nclass,
                max_tile_n=max_tile_n, single_buffer_weights=True)
            jax.block_until_ready(out)
            _SINGLE_BUFFER_WEIGHTS_OK = True
            return out
        except Exception:
            # This jax/libtpu combo rejects single-buffered block specs; fall
            # back to default (double-buffered) resident weights.
            _SINGLE_BUFFER_WEIGHTS_OK = False
    return _mlp_forward_impl(
        x, w1_p, b1_p, w2_p, b2_p, nclass=nclass, max_tile_n=max_tile_n,
        single_buffer_weights=_SINGLE_BUFFER_WEIGHTS_OK)


if __name__ == "__main__":
    # Small shapes consistent with the module: N nodes, nfeature -> nhid -> nclass.
    N, nfeature, nhid, nclass = 8, 32, 32, 16

    key = jax.random.PRNGKey(0)
    kx, kw1, kb1, kw2, kb2 = jax.random.split(key, 5)

    x = jax.random.normal(kx, (N, nfeature), dtype=jnp.float32)
    # Deterministic "Linear" params (stored pre-transposed: [in, out]).
    w1 = jax.random.normal(kw1, (nfeature, nhid), dtype=jnp.float32) * 0.1
    b1 = jax.random.normal(kb1, (1, nhid), dtype=jnp.float32) * 0.1
    w2 = jax.random.normal(kw2, (nhid, nclass), dtype=jnp.float32) * 0.1
    b2 = jax.random.normal(kb2, (1, nclass), dtype=jnp.float32) * 0.1

    # One-time param prep (pad + bf16 cast), then the fused forward.
    w1_p, b1_p, w2_p, b2_p, nclass_out = prepare_mlp_params(w1, b1, w2, b2)
    out = mlp_forward(x, w1_p, b1_p, w2_p, b2_p, nclass_out)
    jax.block_until_ready(out)

    # Reference 1: same bf16-matmul-input / f32-accumulate math as the kernel.
    bf = jnp.bfloat16
    h_ref = jnp.maximum(
        jnp.dot(x.astype(bf), w1.astype(bf),
                preferred_element_type=jnp.float32) + b1, 0.0)
    logits_ref = jnp.dot(h_ref.astype(bf), w2.astype(bf),
                         preferred_element_type=jnp.float32) + b2
    ref_bf16 = jax.nn.log_softmax(logits_ref, axis=-1)
    # Reference 2: the original f32 module (loose check due to bf16 rounding).
    ref_f32 = jax.nn.log_softmax(
        jnp.maximum(x @ w1 + b1, 0.0) @ w2 + b2, axis=-1)

    assert out.shape == (N, nclass), f"bad shape {out.shape}"
    assert jnp.allclose(out, ref_bf16, atol=1e-3, rtol=1e-3), \
        "mismatch vs bf16-matmul reference"
    assert jnp.allclose(out, ref_f32, atol=5e-2), \
        "mismatch vs f32 module reference"

    print("KERNEL_OK")
</pallas_src>

<mosaic_0001>
module attributes {stable_mosaic.version = 11 : i64} {
  func.func @mlp_kernel(%arg0: i32, %arg1: memref<8x128xbf16, #tpu.memory_space<vmem>>, %arg2: memref<128x128xbf16, #tpu.memory_space<vmem>>, %arg3: memref<1x128xf32, #tpu.memory_space<vmem>>, %arg4: memref<128x128xbf16, #tpu.memory_space<vmem>>, %arg5: memref<1x128xf32, #tpu.memory_space<vmem>>, %arg6: memref<8x128xf32, #tpu.memory_space<vmem>>) attributes {dimension_semantics = [#tpu.dimension_semantics<arbitrary>], iteration_bounds = array<i64: 1>, scalar_prefetch = 0 : i64, scratch_operands = 0 : i64, tpu.core_type = #tpu.core_type<tc>, window_params = [{transform_indices = @transform_0, window_bounds = array<i64: 8, 128>}, {pipeline_mode = #tpu.pipeline_mode<synchronous>, transform_indices = @transform_1, window_bounds = array<i64: 128, 128>}, {pipeline_mode = #tpu.pipeline_mode<synchronous>, transform_indices = @transform_2, window_bounds = array<i64: 1, 128>}, {pipeline_mode = #tpu.pipeline_mode<synchronous>, transform_indices = @transform_3, window_bounds = array<i64: 128, 128>}, {pipeline_mode = #tpu.pipeline_mode<synchronous>, transform_indices = @transform_4, window_bounds = array<i64: 1, 128>}, {transform_indices = @transform_5, window_bounds = array<i64: 8, 128>}]} {
    %c0 = arith.constant 0 : index
    %c0_0 = arith.constant 0 : index
    %0 = vector.load %arg1[%c0, %c0_0] : memref<8x128xbf16, #tpu.memory_space<vmem>>, vector<8x128xbf16>
    %c0_1 = arith.constant 0 : index
    %c0_2 = arith.constant 0 : index
    %1 = vector.load %arg2[%c0_1, %c0_2] : memref<128x128xbf16, #tpu.memory_space<vmem>>, vector<128x128xbf16>
    %cst = arith.constant dense<0.000000e+00> : vector<8x128xf32>
    %2 = tpu.matmul %0, %1, %cst {dimension_numbers = #tpu.dot_dimension_numbers<[1], [0], [0], [1], [0, 0, 1, 1], [], []>} : vector<8x128xbf16>, vector<128x128xbf16>, vector<8x128xf32> -> vector<8x128xf32>
    %c0_3 = arith.constant 0 : index
    %c0_4 = arith.constant 0 : index
    %3 = vector.load %arg3[%c0_3, %c0_4] : memref<1x128xf32, #tpu.memory_space<vmem>>, vector<1x128xf32>
    %4 = vector.broadcast %3 : vector<1x128xf32> to vector<8x128xf32>
    %5 = arith.addf %2, %4 : vector<8x128xf32>
    %cst_5 = arith.constant 0.000000e+00 : f32
    %6 = vector.broadcast %cst_5 : f32 to vector<8x128xf32>
    %7 = arith.maximumf %5, %6 : vector<8x128xf32>
    %8 = arith.truncf %7 : vector<8x128xf32> to vector<8x128xbf16>
    %c0_6 = arith.constant 0 : index
    %c0_7 = arith.constant 0 : index
    %9 = vector.load %arg4[%c0_6, %c0_7] : memref<128x128xbf16, #tpu.memory_space<vmem>>, vector<128x128xbf16>
    %cst_8 = arith.constant dense<0.000000e+00> : vector<8x128xf32>
    %10 = tpu.matmul %8, %9, %cst_8 {dimension_numbers = #tpu.dot_dimension_numbers<[1], [0], [0], [1], [0, 0, 1, 1], [], []>} : vector<8x128xbf16>, vector<128x128xbf16>, vector<8x128xf32> -> vector<8x128xf32>
    %c0_9 = arith.constant 0 : index
    %c0_10 = arith.constant 0 : index
    %11 = vector.load %arg5[%c0_9, %c0_10] : memref<1x128xf32, #tpu.memory_space<vmem>>, vector<1x128xf32>
    %12 = vector.broadcast %11 : vector<1x128xf32> to vector<8x128xf32>
    %13 = arith.addf %10, %12 : vector<8x128xf32>
    %cst_11 = arith.constant dense<0xFF800000> : vector<8xf32>
    %14 = vector.multi_reduction <maximumf>, %13, %cst_11 [1] : vector<8x128xf32> to vector<8xf32>
    %15 = vector.shape_cast %14 : vector<8xf32> to vector<8x1xf32>
    %16 = vector.broadcast %15 : vector<8x1xf32> to vector<8x128xf32>
    %17 = arith.subf %13, %16 : vector<8x128xf32>
    %18 = math.exp %17 : vector<8x128xf32>
    %cst_12 = arith.constant dense<0.000000e+00> : vector<8xf32>
    %19 = vector.multi_reduction <add>, %18, %cst_12 [1] : vector<8x128xf32> to vector<8xf32>
    %20 = vector.shape_cast %19 : vector<8xf32> to vector<8x1xf32>
    %21 = math.log %20 : vector<8x1xf32>
    %22 = vector.broadcast %21 : vector<8x1xf32> to vector<8x128xf32>
    %23 = arith.subf %17, %22 : vector<8x128xf32>
    %c0_13 = arith.constant 0 : index
    %c0_14 = arith.constant 0 : index
    %24 = vector.load %arg6[%c0_13, %c0_14] : memref<8x128xf32, #tpu.memory_space<vmem>>, vector<8x128xf32>
    tpu.vector_store %arg6[%c0_13, %c0_14], %23 {strides = array<i32>} : memref<8x128xf32, #tpu.memory_space<vmem>>, vector<8x128xf32>,
    return
  }
  func.func @transform_0(%arg0: i32) -> (i32, i32) {
    %c0_i32 = arith.constant 0 : i32
    %c0_i32_0 = arith.constant 0 : i32
    return %arg0, %c0_i32 : i32, i32
  }
  func.func @transform_1(%arg0: i32) -> (i32, i32) {
    %c0_i32 = arith.constant 0 : i32
    %c0_i32_0 = arith.constant 0 : i32
    %c0_i32_1 = arith.constant 0 : i32
    return %c0_i32, %c0_i32_0 : i32, i32
  }
  func.func @transform_2(%arg0: i32) -> (i32, i32) {
    %c0_i32 = arith.constant 0 : i32
    %c0_i32_0 = arith.constant 0 : i32
    %c0_i32_1 = arith.constant 0 : i32
    return %c0_i32, %c0_i32_0 : i32, i32
  }
  func.func @transform_3(%arg0: i32) -> (i32, i32) {
    %c0_i32 = arith.constant 0 : i32
    %c0_i32_0 = arith.constant 0 : i32
    %c0_i32_1 = arith.constant 0 : i32
    return %c0_i32, %c0_i32_0 : i32, i32
  }
  func.func @transform_4(%arg0: i32) -> (i32, i32) {
    %c0_i32 = arith.constant 0 : i32
    %c0_i32_0 = arith.constant 0 : i32
    %c0_i32_1 = arith.constant 0 : i32
    return %c0_i32, %c0_i32_0 : i32, i32
  }
  func.func @transform_5(%arg0: i32) -> (i32, i32) {
    %c0_i32 = arith.constant 0 : i32
    %c0_i32_0 = arith.constant 0 : i32
    return %arg0, %c0_i32 : i32, i32
  }
}

module attributes {stable_mosaic.version = 11 : i64} {
  func.func @mlp_kernel(%arg0: i32, %arg1: memref<8x128xbf16, #tpu.memory_space<vmem>>, %arg2: memref<128x128xbf16, #tpu.memory_space<vmem>>, %arg3: memref<1x128xf32, #tpu.memory_space<vmem>>, %arg4: memref<128x128xbf16, #tpu.memory_space<vmem>>, %arg5: memref<1x128xf32, #tpu.memory_space<vmem>>, %arg6: memref<8x128xf32, #tpu.memory_space<vmem>>) attributes {dimension_semantics = [#tpu.dimension_semantics<arbitrary>], iteration_bounds = array<i64: 1>, scalar_prefetch = 0 : i64, scratch_operands = 0 : i64, tpu.core_type = #tpu.core_type<tc>, window_params = [{transform_indices = @transform_0, window_bounds = array<i64: 8, 128>}, {pipeline_mode = #tpu.pipeline_mode<synchronous>, transform_indices = @transform_1, window_bounds = array<i64: 128, 128>}, {pipeline_mode = #tpu.pipeline_mode<synchronous>, transform_indices = @transform_2, window_bounds = array<i64: 1, 128>}, {pipeline_mode = #tpu.pipeline_mode<synchronous>, transform_indices = @transform_3, window_bounds = array<i64: 128, 128>}, {pipeline_mode = #tpu.pipeline_mode<synchronous>, transform_indices = @transform_4, window_bounds = array<i64: 1, 128>}, {transform_indices = @transform_5, window_bounds = array<i64: 8, 128>}]} {
    %c0 = arith.constant 0 : index
    %c0_0 = arith.constant 0 : index
    %0 = vector.load %arg1[%c0, %c0_0] : memref<8x128xbf16, #tpu.memory_space<vmem>>, vector<8x128xbf16>
    %c0_1 = arith.constant 0 : index
    %c0_2 = arith.constant 0 : index
    %1 = vector.load %arg2[%c0_1, %c0_2] : memref<128x128xbf16, #tpu.memory_space<vmem>>, vector<128x128xbf16>
    %cst = arith.constant dense<0.000000e+00> : vector<8x128xf32>
    %2 = tpu.matmul %0, %1, %cst {dimension_numbers = #tpu.dot_dimension_numbers<[1], [0], [0], [1], [0, 0, 1, 1], [], []>} : vector<8x128xbf16>, vector<128x128xbf16>, vector<8x128xf32> -> vector<8x128xf32>
    %c0_3 = arith.constant 0 : index
    %c0_4 = arith.constant 0 : index
    %3 = vector.load %arg3[%c0_3, %c0_4] : memref<1x128xf32, #tpu.memory_space<vmem>>, vector<1x128xf32>
    %4 = vector.broadcast %3 : vector<1x128xf32> to vector<8x128xf32>
    %5 = arith.addf %2, %4 : vector<8x128xf32>
    %cst_5 = arith.constant 0.000000e+00 : f32
    %6 = vector.broadcast %cst_5 : f32 to vector<8x128xf32>
    %7 = arith.maximumf %5, %6 : vector<8x128xf32>
    %8 = arith.truncf %7 : vector<8x128xf32> to vector<8x128xbf16>
    %c0_6 = arith.constant 0 : index
    %c0_7 = arith.constant 0 : index
    %9 = vector.load %arg4[%c0_6, %c0_7] : memref<128x128xbf16, #tpu.memory_space<vmem>>, vector<128x128xbf16>
    %cst_8 = arith.constant dense<0.000000e+00> : vector<8x128xf32>
    %10 = tpu.matmul %8, %9, %cst_8 {dimension_numbers = #tpu.dot_dimension_numbers<[1], [0], [0], [1], [0, 0, 1, 1], [], []>} : vector<8x128xbf16>, vector<128x128xbf16>, vector<8x128xf32> -> vector<8x128xf32>
    %c0_9 = arith.constant 0 : index
    %c0_10 = arith.constant 0 : index
    %11 = vector.load %arg5[%c0_9, %c0_10] : memref<1x128xf32, #tpu.memory_space<vmem>>, vector<1x128xf32>
    %12 = vector.broadcast %11 : vector<1x128xf32> to vector<8x128xf32>
    %13 = arith.addf %10, %12 : vector<8x128xf32>
    %cst_11 = arith.constant dense<0xFF800000> : vector<8xf32>
    %14 = vector.multi_reduction <maximumf>, %13, %cst_11 [1] : vector<8x128xf32> to vector<8xf32>
    %15 = vector.shape_cast %14 : vector<8xf32> to vector<8x1xf32>
    %16 = vector.broadcast %15 : vector<8x1xf32> to vector<8x128xf32>
    %17 = arith.subf %13, %16 : vector<8x128xf32>
    %18 = math.exp %17 : vector<8x128xf32>
    %cst_12 = arith.constant dense<0.000000e+00> : vector<8xf32>
    %19 = vector.multi_reduction <add>, %18, %cst_12 [1] : vector<8x128xf32> to vector<8xf32>
    %20 = vector.shape_cast %19 : vector<8xf32> to vector<8x1xf32>
    %21 = math.log %20 : vector<8x1xf32>
    %22 = vector.broadcast %21 : vector<8x1xf32> to vector<8x128xf32>
    %23 = arith.subf %17, %22 : vector<8x128xf32>
    %c0_13 = arith.constant 0 : index
    %c0_14 = arith.constant 0 : index
    %24 = vector.load %arg6[%c0_13, %c0_14] : memref<8x128xf32, #tpu.memory_space<vmem>>, vector<8x128xf32>
    tpu.vector_store %arg6[%c0_13, %c0_14], %23 {strides = array<i32>} : memref<8x128xf32, #tpu.memory_space<vmem>>, vector<8x128xf32>,
    return
  }
  func.func @transform_0(%arg0: i32) -> (i32, i32) {
    %c0_i32 = arith.constant 0 : i32
    %c0_i32_0 = arith.constant 0 : i32
    return %arg0, %c0_i32 : i32, i32
  }
  func.func @transform_1(%arg0: i32) -> (i32, i32) {
    %c0_i32 = arith.constant 0 : i32
    %c0_i32_0 = arith.constant 0 : i32
    %c0_i32_1 = arith.constant 0 : i32
    return %c0_i32, %c0_i32_0 : i32, i32
  }
  func.func @transform_2(%arg0: i32) -> (i32, i32) {
    %c0_i32 = arith.constant 0 : i32
    %c0_i32_0 = arith.constant 0 : i32
    %c0_i32_1 = arith.constant 0 : i32
    return %c0_i32, %c0_i32_0 : i32, i32
  }
  func.func @transform_3(%arg0: i32) -> (i32, i32) {
    %c0_i32 = arith.constant 0 : i32
    %c0_i32_0 = arith.constant 0 : i32
    %c0_i32_1 = arith.constant 0 : i32
    return %c0_i32, %c0_i32_0 : i32, i32
  }
  func.func @transform_4(%arg0: i32) -> (i32, i32) {
    %c0_i32 = arith.constant 0 : i32
    %c0_i32_0 = arith.constant 0 : i32
    %c0_i32_1 = arith.constant 0 : i32
    return %c0_i32, %c0_i32_0 : i32, i32
  }
  func.func @transform_5(%arg0: i32) -> (i32, i32) {
    %c0_i32 = arith.constant 0 : i32
    %c0_i32_0 = arith.constant 0 : i32
    return %arg0, %c0_i32 : i32, i32
  }
}

</mosaic_0001>

<bundles_post_ra>
// kernel: _mlp_forward_impl.1
= control target key start
LH: loop header
LB: loop body
LE: loop exit
PB: predicated region body
PF: predicated region fallthrough
CT: control target
= control target key end

     0   :  { %10 = vsyncpa [#allocation3], 0  ;;  %s526_s0 = inlined_call_operand.vmem [shape: bf16[8,128], index: 0, kind: input, shape index: {}]   ;;  %s527_s1 = inlined_call_operand.hbm [shape: bf16[128,128], index: 1, kind: input, shape index: {}]   ;;  %s528_s2 = inlined_call_operand.vmem [shape: f32[1,128], index: 2, kind: input, shape index: {}]   ;;  %s529_s3 = inlined_call_operand.hbm [shape: bf16[128,128], index: 3, kind: input, shape index: {}]   ;;  %s530_s4 = inlined_call_operand.vmem [shape: f32[1,128], index: 4, kind: input, shape index: {}]   ;;  %s531_s5 = inlined_call_operand.hbm [shape: f32[8,128], index: 5, kind: output, shape index: {}]  }
   0x1   :  { %11 = vsyncpa [#allocation6], 0 }
   0x2   :  { %12 = vsyncpa [#allocation4], 0  ;;  %s471_s18 = smov [#allocation2]  }
   0x3   :  { %s20_s19 = sshll.u32 %s471_s18, 4  ;;  %s21_s19 = int_to_ptr.vmem [resolvable:$true] %s20_s19 }
   0x4   :  { %s413_s20 = scalar_lea.vmem %s21_s19, 1024  ;;  %p418_p1 = scmp.lt.s32.totalorder %s21_s19, %s21_s19 }
   0x5   :  { %p414_p0 = scmp.ne.s32.totalorder %s21_s19, %s413_s20  ;;  %p419_p2 = scmp.lt.s32.totalorder %s413_s20, %s413_s20 }
   0x7   :  { %p420_p3 = por %p419_p2, %p418_p1 }
   0x9   :  { %p421_p4 = pnand %p420_p3, %p414_p0 }
   0xb   :  { %424 = shalt.err (!%p421_p4)
}
   0xc   :  { %s472_s21 = smov 64   ;;  %s473_s22 = smov 4  }
   0xd   :  { %26 = dma.hbm_to_vmem [thread:$0]  %s527_s1, 1024, %s21_s19, [#allocation3], %s472_s21, %s472_s21, %s473_s22  }
   0xe   :  { %s474_s25 = smov [#allocation5]  }
   0xf   :  { %s34_s26 = sshll.u32 %s474_s25, 4  ;;  %s35_s26 = int_to_ptr.vmem [resolvable:$true] %s34_s26 }
  0x10   :  { %s433_s27 = scalar_lea.vmem %s35_s26, 1024  ;;  %p438_p6 = scmp.lt.s32.totalorder %s35_s26, %s35_s26 }
  0x11   :  { %p434_p5 = scmp.ne.s32.totalorder %s35_s26, %s433_s27  ;;  %p439_p7 = scmp.lt.s32.totalorder %s433_s27, %s433_s27 }
  0x13   :  { %p440_p8 = por %p439_p7, %p438_p6 }
  0x15   :  { %p441_p9 = pnand %p440_p8, %p434_p5 }
  0x17   :  { %444 = shalt.err (!%p441_p9)
}
  0x18   :  { %40 = dma.hbm_to_vmem [thread:$0]  %s529_s3, 1024, %s35_s26, [#allocation6], %s472_s21, %s472_s21, %s473_s22  }
  0x19   :  { %465 = dma.done.wait [#allocation3], 1024  }
  0x1a   :  { %466 = vsyncadd [#allocation3], 4294966272 }
  0x1b   :  { %467 = dma.done.wait [#allocation6], 1024  }
  0x1c   :  { %468 = vsyncadd [#allocation6], 4294966272  ;;  %v475_v0 = vmov 0.0   ;;  %vm476_vm0 = vmmov 0   ;;  %v385_v1 = vld [vmem:[#allocation2 + $0x38] sm:$0xff]   ;;  %v386_v2 = vld [vmem:[#allocation2 + $0x30] sm:$0xff]  }
  0x1d   :  { %338 = vmatprep.subr.bf16.mxu0 %v475_v0  ;;  %354 = vmatprep.mubr.msk.bf16.mxu0 %vm476_vm0, %v475_v0  ;;  %v387_v3 = vld [vmem:[#allocation2 + $0x28] sm:$0xff]   ;;  %v393_v4 = vld [vmem:[#allocation5 + $0x38] sm:$0xff]   ;;  %v388_v5 = vld [vmem:[#allocation2 + $0x20] sm:$0xff]  }
  0x1e   :  { %358 = vmatprep.subr.bf16.mxu1 %v475_v0  ;;  %374 = vmatprep.mubr.msk.bf16.mxu1 %vm476_vm0, %v475_v0  ;;  %v394_v6 = vld [vmem:[#allocation5 + $0x30] sm:$0xff]   ;;  %v389_v7 = vld [vmem:[#allocation2 + $0x18] sm:$0xff]   ;;  %v395_v8 = vld [vmem:[#allocation5 + $0x28] sm:$0xff]  }
  0x1f   :  { %339 = vmatpush3.bf16.msra.mxu0 %v385_v1  ;;  %359 = vmatpush3.bf16.msra.mxu1 %v393_v4  ;;  %v390_v9 = vld [vmem:[#allocation2 + $0x10] sm:$0xff]   ;;  %v396_v10 = vld [vmem:[#allocation5 + $0x20] sm:$0xff]   ;;  %v391_v11 = vld [vmem:[#allocation2 + $0x8] sm:$0xff]  }
  0x20   :  { %340 = vmatprep.subr.bf16.mxu0 %v475_v0  ;;  %360 = vmatprep.subr.bf16.mxu1 %v475_v0  ;;  %v397_v12 = vld [vmem:[#allocation5 + $0x18] sm:$0xff]   ;;  %v392_v13 = vld [vmem:[#allocation2] sm:$0xff]   ;;  %v398_v14 = vld [vmem:[#allocation5 + $0x10] sm:$0xff]  }
  0x21   :  { %v50_v15 = vld [vmem:[%s526_s0] sm:$0xf]  ;;  %v399_v16 = vld [vmem:[#allocation5 + $0x8] sm:$0xff]  }
  0x22   :  { %v400_v17 = vld [vmem:[#allocation5] sm:$0xff]  }
  0x23   :  { %341 = vmatpush3.bf16.msra.mxu0 %v386_v2  ;;  %361 = vmatpush3.bf16.msra.mxu1 %v394_v6  ;;  %v302_v18 = vld [vmem:[%s528_s2] ss:$0 sm:$0xff]  ;;  %s477_s2 = smov [#allocation7]  }
  0x24   :  { %342 = vmatprep.subr.bf16.mxu0 %v475_v0  ;;  %362 = vmatprep.subr.bf16.mxu1 %v475_v0  ;;  %v311_v26 = vld [vmem:[%s530_s4] ss:$0 sm:$0xff]  ;;  %s292_s8 = sshll.u32 %s477_s2, 4  ;;  %s293_s8 = int_to_ptr.vmem [resolvable:$true] %s292_s8 }
  0x25   :  { %s445_s4 = scalar_lea.vmem %s293_s8, 128  ;;  %p450_p11 = scmp.lt.s32.totalorder %s293_s8, %s293_s8 }
  0x26   :  { %p446_p10 = scmp.ne.s32.totalorder %s293_s8, %s445_s4  ;;  %p451_p12 = scmp.lt.s32.totalorder %s445_s4, %s445_s4 }
  0x27   :  { %343 = vmatpush3.bf16.msra.mxu0 %v387_v3  ;;  %363 = vmatpush3.bf16.msra.mxu1 %v395_v8 }
  0x28   :  { %344 = vmatprep.subr.bf16.mxu0 %v475_v0  ;;  %364 = vmatprep.subr.bf16.mxu1 %v475_v0  ;;  %p452_p13 = por %p451_p12, %p450_p11 }
  0x2a   :  { %p453_p0 = pnand %p452_p13, %p446_p10 }
  0x2b   :  { %345 = vmatpush3.bf16.msra.mxu0 %v388_v5  ;;  %365 = vmatpush3.bf16.msra.mxu1 %v396_v10 }
  0x2c   :  { %346 = vmatprep.subr.bf16.mxu0 %v475_v0  ;;  %366 = vmatprep.subr.bf16.mxu1 %v475_v0 }
  0x2f   :  { %347 = vmatpush3.bf16.msra.mxu0 %v389_v7  ;;  %367 = vmatpush3.bf16.msra.mxu1 %v397_v12 }
  0x30   :  { %348 = vmatprep.subr.bf16.mxu0 %v475_v0  ;;  %368 = vmatprep.subr.bf16.mxu1 %v475_v0 }
  0x33   :  { %349 = vmatpush3.bf16.msra.mxu0 %v390_v9  ;;  %369 = vmatpush3.bf16.msra.mxu1 %v398_v14 }
  0x34   :  { %350 = vmatprep.subr.bf16.mxu0 %v475_v0  ;;  %370 = vmatprep.subr.bf16.mxu1 %v475_v0 }
  0x37   :  { %351 = vmatpush3.bf16.msra.mxu0 %v391_v11  ;;  %371 = vmatpush3.bf16.msra.mxu1 %v399_v16 }
  0x38   :  { %352 = vmatprep.subr.bf16.mxu0 %v475_v0  ;;  %372 = vmatprep.subr.bf16.mxu1 %v475_v0 }
  0x3b   :  { %353 = vmatpush3.bf16.msra.mxu0 %v392_v13  ;;  %373 = vmatpush3.bf16.msra.mxu1 %v400_v17 }
  0x3e   :  { %355 = vmatmul.mubr.bf16.vlgmr.msra.gmra.mxu0 %v50_v15 }
  0xfe   :  { %v156_v19 = vpop.f32.mrf.mxu0 }
  0xff   :  { %v157_v20 = vadd.f32 %v302_v18, %v156_v19 }
 0x100   :  { %v356_v21 = vpop.f32.mrf.mxu0 }
 0x101   :  { %v162_v22 = vmax.f32 %v157_v20, 0.0 }
 0x102   :  { %v159_v23 = vpop.f32.mrf.mxu0 }
 0x103   :  { %v163_v24 = vpack.c.bf16 %v162_v22, %v162_v22 }
 0x104   :  { %v357_v25 = vpop.f32.mrf.mxu0 }
 0x105   :  { %375 = vmatmul.mubr.bf16.vlgmr.msra.gmra.mxu1 %v163_v24 }
 0x1c5   :  { %v269_v27 = vpop.f32.mrf.mxu1 }
 0x1c6   :  { %v270_v28 = vadd.f32 %v311_v26, %v269_v27 }
 0x1c7   :  { %v376_v29 = vpop.f32.mrf.mxu1 }
 0x1c8   :  { %275 = vmax.xlane.f32.xlu0 %v270_v28 }
 0x1c9   :  { %v272_v30 = vpop.f32.mrf.mxu1 }
 0x1cb   :  { %v377_v31 = vpop.f32.mrf.mxu1 }
 0x251   :  { %v276_v32 = vpop.xlane.xlu0 %275 }
 0x252   :  { %v277_v33 = vsub.f32 %v270_v28, %v276_v32 }
 0x254   :  { %v278_v34 = vmul.f32 1.442695, %v277_v33 }
 0x256   :  { %401 = vpow2.f32 %v278_v34 }
 0x263   :  { %v402_v35 = vpop.eup %401 }
 0x264   :  { %280 = vadd.xlane.f32.xlu0 %v402_v35 }
 0x2ed   :  { %v281_v36 = vpop.xlane.xlu0 %280 }
 0x2ee   :  { %403 = vlog2.f32 %v281_v36 }
 0x2fb   :  { %v404_v37 = vpop.eup %403 }
 0x2fc   :  { %v283_v38 = vmul.f32 0.6931472, %v404_v37 }
 0x2fe   :  { %v284_v39 = vsub.f32 %v277_v33, %v283_v38 }
 0x300   :  { %285 = vst [vmem:[#allocation7] sm:$0xff] %v284_v39 }
 0x301   :  { %456 = shalt.err (!%p453_p0)
}
 0x302   :  { %295 = dma.vmem_to_hbm [thread:$0]  %s293_s8, 128, %s531_s5, [#allocation4]  }
 0x303   :  { %469 = dma.done.wait [#allocation4], 128  }
 0x304   :  { %470 = vsyncadd [#allocation4], 4294967168 }
 0x305   :  { %299 = vsyncpa [#allocation3], 1 }
 0x306   :  { %300 = vsyncpa [#allocation6], 1 }
 0x307   :  { %301 = vsyncpa [#allocation4], 1 }

// kernel: _mlp_forward_impl.1
= control target key start
LH: loop header
LB: loop body
LE: loop exit
PB: predicated region body
PF: predicated region fallthrough
CT: control target
= control target key end

     0   :  { %10 = vsyncpa [#allocation3], 0  ;;  %s526_s0 = inlined_call_operand.vmem [shape: bf16[8,128], index: 0, kind: input, shape index: {}]   ;;  %s527_s1 = inlined_call_operand.hbm [shape: bf16[128,128], index: 1, kind: input, shape index: {}]   ;;  %s528_s2 = inlined_call_operand.vmem [shape: f32[1,128], index: 2, kind: input, shape index: {}]   ;;  %s529_s3 = inlined_call_operand.hbm [shape: bf16[128,128], index: 3, kind: input, shape index: {}]   ;;  %s530_s4 = inlined_call_operand.vmem [shape: f32[1,128], index: 4, kind: input, shape index: {}]   ;;  %s531_s5 = inlined_call_operand.hbm [shape: f32[8,128], index: 5, kind: output, shape index: {}]  }
   0x1   :  { %11 = vsyncpa [#allocation6], 0 }
   0x2   :  { %12 = vsyncpa [#allocation4], 0  ;;  %s471_s18 = smov [#allocation2]  }
   0x3   :  { %s20_s19 = sshll.u32 %s471_s18, 4  ;;  %s21_s19 = int_to_ptr.vmem [resolvable:$true] %s20_s19 }
   0x4   :  { %s413_s20 = scalar_lea.vmem %s21_s19, 1024  ;;  %p418_p1 = scmp.lt.s32.totalorder %s21_s19, %s21_s19 }
   0x5   :  { %p414_p0 = scmp.ne.s32.totalorder %s21_s19, %s413_s20  ;;  %p419_p2 = scmp.lt.s32.totalorder %s413_s20, %s413_s20 }
   0x7   :  { %p420_p3 = por %p419_p2, %p418_p1 }
   0x9   :  { %p421_p4 = pnand %p420_p3, %p414_p0 }
   0xb   :  { %424 = shalt.err (!%p421_p4)
}
   0xc   :  { %s472_s21 = smov 64   ;;  %s473_s22 = smov 4  }
   0xd   :  { %26 = dma.hbm_to_vmem [thread:$0]  %s527_s1, 1024, %s21_s19, [#allocation3], %s472_s21, %s472_s21, %s473_s22  }
   0xe   :  { %s474_s25 = smov [#allocation5]  }
   0xf   :  { %s34_s26 = sshll.u32 %s474_s25, 4  ;;  %s35_s26 = int_to_ptr.vmem [resolvable:$true] %s34_s26 }
  0x10   :  { %s433_s27 = scalar_lea.vmem %s35_s26, 1024  ;;  %p438_p6 = scmp.lt.s32.totalorder %s35_s26, %s35_s26 }
  0x11   :  { %p434_p5 = scmp.ne.s32.totalorder %s35_s26, %s433_s27  ;;  %p439_p7 = scmp.lt.s32.totalorder %s433_s27, %s433_s27 }
  0x13   :  { %p440_p8 = por %p439_p7, %p438_p6 }
  0x15   :  { %p441_p9 = pnand %p440_p8, %p434_p5 }
  0x17   :  { %444 = shalt.err (!%p441_p9)
}
  0x18   :  { %40 = dma.hbm_to_vmem [thread:$0]  %s529_s3, 1024, %s35_s26, [#allocation6], %s472_s21, %s472_s21, %s473_s22  }
  0x19   :  { %465 = dma.done.wait [#allocation3], 1024  }
  0x1a   :  { %466 = vsyncadd [#allocation3], 4294966272 }
  0x1b   :  { %467 = dma.done.wait [#allocation6], 1024  }
  0x1c   :  { %468 = vsyncadd [#allocation6], 4294966272  ;;  %v475_v0 = vmov 0.0   ;;  %vm476_vm0 = vmmov 0   ;;  %v385_v1 = vld [vmem:[#allocation2 + $0x38] sm:$0xff]   ;;  %v386_v2 = vld [vmem:[#allocation2 + $0x30] sm:$0xff]  }
  0x1d   :  { %338 = vmatprep.subr.bf16.mxu0 %v475_v0  ;;  %354 = vmatprep.mubr.msk.bf16.mxu0 %vm476_vm0, %v475_v0  ;;  %v387_v3 = vld [vmem:[#allocation2 + $0x28] sm:$0xff]   ;;  %v393_v4 = vld [vmem:[#allocation5 + $0x38] sm:$0xff]   ;;  %v388_v5 = vld [vmem:[#allocation2 + $0x20] sm:$0xff]  }
  0x1e   :  { %358 = vmatprep.subr.bf16.mxu1 %v475_v0  ;;  %374 = vmatprep.mubr.msk.bf16.mxu1 %vm476_vm0, %v475_v0  ;;  %v394_v6 = vld [vmem:[#allocation5 + $0x30] sm:$0xff]   ;;  %v389_v7 = vld [vmem:[#allocation2 + $0x18] sm:$0xff]   ;;  %v395_v8 = vld [vmem:[#allocation5 + $0x28] sm:$0xff]  }
  0x1f   :  { %339 = vmatpush3.bf16.msra.mxu0 %v385_v1  ;;  %359 = vmatpush3.bf16.msra.mxu1 %v393_v4  ;;  %v390_v9 = vld [vmem:[#allocation2 + $0x10] sm:$0xff]   ;;  %v396_v10 = vld [vmem:[#allocation5 + $0x20] sm:$0xff]   ;;  %v391_v11 = vld [vmem:[#allocation2 + $0x8] sm:$0xff]  }
  0x20   :  { %340 = vmatprep.subr.bf16.mxu0 %v475_v0  ;;  %360 = vmatprep.subr.bf16.mxu1 %v475_v0  ;;  %v397_v12 = vld [vmem:[#allocation5 + $0x18] sm:$0xff]   ;;  %v392_v13 = vld [vmem:[#allocation2] sm:$0xff]   ;;  %v398_v14 = vld [vmem:[#allocation5 + $0x10] sm:$0xff]  }
  0x21   :  { %v50_v15 = vld [vmem:[%s526_s0] sm:$0xf]  ;;  %v399_v16 = vld [vmem:[#allocation5 + $0x8] sm:$0xff]  }
  0x22   :  { %v400_v17 = vld [vmem:[#allocation5] sm:$0xff]  }
  0x23   :  { %341 = vmatpush3.bf16.msra.mxu0 %v386_v2  ;;  %361 = vmatpush3.bf16.msra.mxu1 %v394_v6  ;;  %v302_v18 = vld [vmem:[%s528_s2] ss:$0 sm:$0xff]  ;;  %s477_s2 = smov [#allocation7]  }
  0x24   :  { %342 = vmatprep.subr.bf16.mxu0 %v475_v0  ;;  %362 = vmatprep.subr.bf16.mxu1 %v475_v0  ;;  %v311_v26 = vld [vmem:[%s530_s4] ss:$0 sm:$0xff]  ;;  %s292_s8 = sshll.u32 %s477_s2, 4  ;;  %s293_s8 = int_to_ptr.vmem [resolvable:$true] %s292_s8 }
  0x25   :  { %s445_s4 = scalar_lea.vmem %s293_s8, 128  ;;  %p450_p11 = scmp.lt.s32.totalorder %s293_s8, %s293_s8 }
  0x26   :  { %p446_p10 = scmp.ne.s32.totalorder %s293_s8, %s445_s4  ;;  %p451_p12 = scmp.lt.s32.totalorder %s445_s4, %s445_s4 }
  0x27   :  { %343 = vmatpush3.bf16.msra.mxu0 %v387_v3  ;;  %363 = vmatpush3.bf16.msra.mxu1 %v395_v8 }
  0x28   :  { %344 = vmatprep.subr.bf16.mxu0 %v475_v0  ;;  %364 = vmatprep.subr.bf16.mxu1 %v475_v0  ;;  %p452_p13 = por %p451_p12, %p450_p11 }
  0x2a   :  { %p453_p0 = pnand %p452_p13, %p446_p10 }
  0x2b   :  { %345 = vmatpush3.bf16.msra.mxu0 %v388_v5  ;;  %365 = vmatpush3.bf16.msra.mxu1 %v396_v10 }
  0x2c   :  { %346 = vmatprep.subr.bf16.mxu0 %v475_v0  ;;  %366 = vmatprep.subr.bf16.mxu1 %v475_v0 }
  0x2f   :  { %347 = vmatpush3.bf16.msra.mxu0 %v389_v7  ;;  %367 = vmatpush3.bf16.msra.mxu1 %v397_v12 }
  0x30   :  { %348 = vmatprep.subr.bf16.mxu0 %v475_v0  ;;  %368 = vmatprep.subr.bf16.mxu1 %v475_v0 }
  0x33   :  { %349 = vmatpush3.bf16.msra.mxu0 %v390_v9  ;;  %369 = vmatpush3.bf16.msra.mxu1 %v398_v14 }
  0x34   :  { %350 = vmatprep.subr.bf16.mxu0 %v475_v0  ;;  %370 = vmatprep.subr.bf16.mxu1 %v475_v0 }
  0x37   :  { %351 = vmatpush3.bf16.msra.mxu0 %v391_v11  ;;  %371 = vmatpush3.bf16.msra.mxu1 %v399_v16 }
  0x38   :  { %352 = vmatprep.subr.bf16.mxu0 %v475_v0  ;;  %372 = vmatprep.subr.bf16.mxu1 %v475_v0 }
  0x3b   :  { %353 = vmatpush3.bf16.msra.mxu0 %v392_v13  ;;  %373 = vmatpush3.bf16.msra.mxu1 %v400_v17 }
  0x3e   :  { %355 = vmatmul.mubr.bf16.vlgmr.msra.gmra.mxu0 %v50_v15 }
  0xfe   :  { %v156_v19 = vpop.f32.mrf.mxu0 }
  0xff   :  { %v157_v20 = vadd.f32 %v302_v18, %v156_v19 }
 0x100   :  { %v356_v21 = vpop.f32.mrf.mxu0 }
 0x101   :  { %v162_v22 = vmax.f32 %v157_v20, 0.0 }
 0x102   :  { %v159_v23 = vpop.f32.mrf.mxu0 }
 0x103   :  { %v163_v24 = vpack.c.bf16 %v162_v22, %v162_v22 }
 0x104   :  { %v357_v25 = vpop.f32.mrf.mxu0 }
 0x105   :  { %375 = vmatmul.mubr.bf16.vlgmr.msra.gmra.mxu1 %v163_v24 }
 0x1c5   :  { %v269_v27 = vpop.f32.mrf.mxu1 }
 0x1c6   :  { %v270_v28 = vadd.f32 %v311_v26, %v269_v27 }
 0x1c7   :  { %v376_v29 = vpop.f32.mrf.mxu1 }
 0x1c8   :  { %275 = vmax.xlane.f32.xlu0 %v270_v28 }
 0x1c9   :  { %v272_v30 = vpop.f32.mrf.mxu1 }
 0x1cb   :  { %v377_v31 = vpop.f32.mrf.mxu1 }
 0x251   :  { %v276_v32 = vpop.xlane.xlu0 %275 }
 0x252   :  { %v277_v33 = vsub.f32 %v270_v28, %v276_v32 }
 0x254   :  { %v278_v34 = vmul.f32 1.442695, %v277_v33 }
 0x256   :  { %401 = vpow2.f32 %v278_v34 }
 0x263   :  { %v402_v35 = vpop.eup %401 }
 0x264   :  { %280 = vadd.xlane.f32.xlu0 %v402_v35 }
 0x2ed   :  { %v281_v36 = vpop.xlane.xlu0 %280 }
 0x2ee   :  { %403 = vlog2.f32 %v281_v36 }
 0x2fb   :  { %v404_v37 = vpop.eup %403 }
 0x2fc   :  { %v283_v38 = vmul.f32 0.6931472, %v404_v37 }
 0x2fe   :  { %v284_v39 = vsub.f32 %v277_v33, %v283_v38 }
 0x300   :  { %285 = vst [vmem:[#allocation7] sm:$0xff] %v284_v39 }
 0x301   :  { %456 = shalt.err (!%p453_p0)
}
 0x302   :  { %295 = dma.vmem_to_hbm [thread:$0]  %s293_s8, 128, %s531_s5, [#allocation4]  }
 0x303   :  { %469 = dma.done.wait [#allocation4], 128  }
 0x304   :  { %470 = vsyncadd [#allocation4], 4294967168 }
 0x305   :  { %299 = vsyncpa [#allocation3], 1 }
 0x306   :  { %300 = vsyncpa [#allocation6], 1 }
 0x307   :  { %301 = vsyncpa [#allocation4], 1 }

</bundles_post_ra>
